<compile_context>
chip_gen: v5e
topology: v5e:2x2
jax: 0.10.0
libtpu: 0.0.40
codegen_flags: <defaults>
</compile_context>

<pallas_src>
import functools

import jax
import jax.numpy as jnp
import numpy as np
from jax import lax
from jax.experimental import pallas as pl
from jax.experimental.pallas import tpu as pltpu


def _round_up(x, m):
    return (x + m - 1) // m * m


def _fast_glu_kernel(x_ref, w_ref, b_ref, o_ref, acc_ref):
    # x_ref:   (tm, tk)           row/contraction tile of the flattened input
    # w_ref:   (2*D_pad, tk)      fused weight, native nn.Linear (out, in) layout
    # b_ref:   (1, 2*D_pad)       fused bias (f32)
    # o_ref:   (tm, D_pad)        output tile
    # acc_ref: (tm, 2*D_pad) f32  accumulator, resident across the K axis
    k = pl.program_id(1)

    @pl.when(k == 0)
    def _():
        acc_ref[...] = jnp.zeros_like(acc_ref)

    # Contract on the last dim of both operands (x @ W.T): weight used in its
    # native layout, native-dtype operands, f32 accumulation on the MXU.
    acc_ref[...] += lax.dot_general(
        x_ref[...], w_ref[...],
        dimension_numbers=(((1,), (1,)), ((), ())),
        preferred_element_type=jnp.float32)

    @pl.when(k == pl.num_programs(1) - 1)
    def _():
        d = o_ref.shape[-1]
        acc = acc_ref[...] + b_ref[...]          # bias add in f32
        a = acc[:, :d]                           # value half
        g = acc[:, d:]                           # gate half
        gate = pl.reciprocal(1.0 + jnp.exp(-g), approx=True)   # sigmoid on EUP
        o_ref[...] = (a * gate).astype(o_ref.dtype)


@functools.partial(jax.jit, static_argnames=("block_m",))
def fast_glu(x, weight, bias, *, block_m=None):
    """x: (..., D); weight: (2D, D); bias: (2D,) — matches nn.Linear(D, 2D)."""
    D = x.shape[-1]
    lead = x.shape[:-1]
    M = int(np.prod(lead)) if lead else 1

    # Lane-dense output: pad the feature dim up to a multiple of 128.
    D_pad = _round_up(max(D, 128), 128)

    # Row tile: real pipelining over M (default 256 rows), bounded so the f32
    # accumulator stays <= 8 MiB even for large D.
    tm = 256 if block_m is None else int(block_m)
    tm = max(8, min(tm, _round_up(M, 8)))
    while tm > 8 and tm * 2 * D_pad * 4 > (8 << 20):
        tm //= 2
    assert tm % 8 == 0, "block_m must be a multiple of 8"
    M_pad = _round_up(M, tm)

    # Contraction tile: multiple of 128 dividing D_pad, weight slab <= ~6 MiB.
    w_itemsize = jnp.dtype(weight.dtype).itemsize
    tk = D_pad
    if D_pad > 128:
        for cand in (1024, 512, 384, 256, 128):
            if D_pad % cand == 0 and 2 * D_pad * cand * w_itemsize <= (6 << 20):
                tk = cand
                break
        else:
            tk = 128

    # ---- pad / lay out operands ------------------------------------------
    x2 = x.reshape(M, D)
    if M_pad != M or D_pad != D:
        x2 = jnp.pad(x2, ((0, M_pad - M), (0, D_pad - D)))

    if D_pad != D:
        # Keep the value half at output columns [0, D_pad) and the gate half
        # at [D_pad, 2*D_pad); weight stays in (out, in) layout, no transpose.
        w2 = jnp.zeros((2 * D_pad, D_pad), dtype=weight.dtype)
        w2 = w2.at[:D, :D].set(weight[:D])
        w2 = w2.at[D_pad:D_pad + D, :D].set(weight[D:])
        b2 = jnp.zeros((2 * D_pad,), dtype=jnp.float32)
        b2 = b2.at[:D].set(bias[:D].astype(jnp.float32))
        b2 = b2.at[D_pad:D_pad + D].set(bias[D:].astype(jnp.float32))
    else:
        w2 = weight
        b2 = bias.astype(jnp.float32)
    b2 = b2.reshape(1, 2 * D_pad)

    grid = (M_pad // tm, D_pad // tk)

    # ---- VMEM budget (double-buffered tiles + accumulator) -----------------
    x_itemsize = jnp.dtype(x.dtype).itemsize
    vmem_bytes = (
        2 * tm * tk * x_itemsize              # x tiles
        + 2 * (2 * D_pad) * tk * w_itemsize   # weight tiles
        + 2 * (2 * D_pad) * 4                 # bias
        + 2 * tm * D_pad * x_itemsize         # output tiles
        + tm * 2 * D_pad * 4                  # f32 accumulator
    )
    vmem_limit = min(max(vmem_bytes + (2 << 20), 16 << 20), 48 << 20)

    cost = pl.CostEstimate(
        flops=2 * M_pad * D_pad * 2 * D_pad,
        transcendentals=M_pad * D_pad,
        bytes_accessed=(M_pad * D_pad * x_itemsize           # x
                        + 2 * D_pad * D_pad * w_itemsize     # weight
                        + 2 * D_pad * 4                      # bias
                        + M_pad * D_pad * x_itemsize),       # out
    )

    out = pl.pallas_call(
        _fast_glu_kernel,
        out_shape=jax.ShapeDtypeStruct((M_pad, D_pad), x.dtype),
        grid_spec=pltpu.PrefetchScalarGridSpec(
            num_scalar_prefetch=0,
            grid=grid,
            in_specs=[
                pl.BlockSpec((tm, tk), lambda i, k: (i, k)),          # x
                pl.BlockSpec((2 * D_pad, tk), lambda i, k: (0, k)),   # W fused
                pl.BlockSpec((1, 2 * D_pad), lambda i, k: (0, 0)),    # bias
            ],
            out_specs=pl.BlockSpec((tm, D_pad), lambda i, k: (i, 0)),
            scratch_shapes=[pltpu.VMEM((tm, 2 * D_pad), jnp.float32)],
        ),
        compiler_params=pltpu.CompilerParams(
            dimension_semantics=("parallel", "arbitrary"),
            vmem_limit_bytes=vmem_limit),
        cost_estimate=cost,
    )(x2, w2, b2)

    out = out[:M, :D]
    return out.reshape(*lead, D)


def _reference(x, weight, bias):
    D = x.shape[-1]
    out = jnp.einsum("...d,od->...o", x, weight) + bias
    return out[..., :D] * jax.nn.sigmoid(out[..., D:])


if __name__ == "__main__":
    in_dim = 32
    batch, seq = 2, 8

    key = jax.random.PRNGKey(0)
    kx, kw, kb = jax.random.split(key, 3)

    x = jax.random.normal(kx, (batch, seq, in_dim), dtype=jnp.float32)
    # Deterministic "Linear(in_dim, 2*in_dim)" params (synthetic init).
    bound = 1.0 / np.sqrt(in_dim)
    weight = jax.random.uniform(kw, (2 * in_dim, in_dim),
                                minval=-bound, maxval=bound,
                                dtype=jnp.float32)
    bias = jax.random.uniform(kb, (2 * in_dim,),
                              minval=-bound, maxval=bound,
                              dtype=jnp.float32)

    out = fast_glu(x, weight, bias)
    jax.block_until_ready(out)

    ref = _reference(x, weight, bias)
    # Tolerance is slightly relaxed because the kernel's sigmoid uses the
    # approximate EUP reciprocal (pl.reciprocal(..., approx=True)).
    np.testing.assert_allclose(np.asarray(out), np.asarray(ref),
                               rtol=2e-2, atol=2e-2)
    assert out.shape == (batch, seq, in_dim)

    print("KERNEL_OK")
</pallas_src>

<mosaic_0001>
module attributes {stable_mosaic.version = 11 : i64} {
  func.func @_fast_glu_kernel(%arg0: i32, %arg1: i32, %arg2: memref<16x128xf32, #tpu.memory_space<vmem>>, %arg3: memref<256x128xf32, #tpu.memory_space<vmem>>, %arg4: memref<1x256xf32, #tpu.memory_space<vmem>>, %arg5: memref<16x128xf32, #tpu.memory_space<vmem>>, %arg6: memref<16x256xf32, #tpu.memory_space<vmem>>) attributes {dimension_semantics = [#tpu.dimension_semantics<parallel>, #tpu.dimension_semantics<arbitrary>], iteration_bounds = array<i64: 1, 1>, scalar_prefetch = 0 : i64, scratch_operands = 1 : i64, tpu.core_type = #tpu.core_type<tc>, window_params = [{transform_indices = @transform_0, window_bounds = array<i64: 16, 128>}, {transform_indices = @transform_1, window_bounds = array<i64: 256, 128>}, {pipeline_mode = #tpu.pipeline_mode<synchronous>, transform_indices = @transform_2, window_bounds = array<i64: 1, 256>}, {transform_indices = @transform_3, window_bounds = array<i64: 16, 128>}]} {
    %c0_i32 = arith.constant 0 : i32
    %0 = arith.cmpi eq, %arg1, %c0_i32 : i32
    %1 = arith.extui %0 : i1 to i32
    %c0_i32_0 = arith.constant 0 : i32
    %2 = arith.cmpi ne, %1, %c0_i32_0 : i32
    scf.if %2 {
      %cst_10 = arith.constant 0.000000e+00 : f32
      %12 = vector.broadcast %cst_10 : f32 to vector<16x256xf32>
      %c0_11 = arith.constant 0 : index
      %c0_12 = arith.constant 0 : index
      %13 = vector.load %arg6[%c0_11, %c0_12] : memref<16x256xf32, #tpu.memory_space<vmem>>, vector<16x256xf32>
      tpu.vector_store %arg6[%c0_11, %c0_12], %12 {strides = array<i32>} : memref<16x256xf32, #tpu.memory_space<vmem>>, vector<16x256xf32>,
    } else {
    }
    %c0 = arith.constant 0 : index
    %c0_1 = arith.constant 0 : index
    %3 = vector.load %arg6[%c0, %c0_1] : memref<16x256xf32, #tpu.memory_space<vmem>>, vector<16x256xf32>
    %c0_2 = arith.constant 0 : index
    %c0_3 = arith.constant 0 : index
    %4 = vector.load %arg2[%c0_2, %c0_3] : memref<16x128xf32, #tpu.memory_space<vmem>>, vector<16x128xf32>
    %c0_4 = arith.constant 0 : index
    %c0_5 = arith.constant 0 : index
    %5 = vector.load %arg3[%c0_4, %c0_5] : memref<256x128xf32, #tpu.memory_space<vmem>>, vector<256x128xf32>
    %cst = arith.constant dense<0.000000e+00> : vector<16x256xf32>
    %6 = tpu.matmul %4, %5, %cst {dimension_numbers = #tpu.dot_dimension_numbers<[1], [1], [0], [0], [0, 0, 1, 0], [], []>} : vector<16x128xf32>, vector<256x128xf32>, vector<16x256xf32> -> vector<16x256xf32>
    %7 = arith.addf %3, %6 : vector<16x256xf32>
    %c0_6 = arith.constant 0 : index
    %c0_7 = arith.constant 0 : index
    %8 = vector.load %arg6[%c0_6, %c0_7] : memref<16x256xf32, #tpu.memory_space<vmem>>, vector<16x256xf32>
    tpu.vector_store %arg6[%c0_6, %c0_7], %7 {strides = array<i32>} : memref<16x256xf32, #tpu.memory_space<vmem>>, vector<16x256xf32>,
    %c0_i32_8 = arith.constant 0 : i32
    %9 = arith.cmpi eq, %arg1, %c0_i32_8 : i32
    %10 = arith.extui %9 : i1 to i32
    %c0_i32_9 = arith.constant 0 : i32
    %11 = arith.cmpi ne, %10, %c0_i32_9 : i32
    scf.if %11 {
      %c0_10 = arith.constant 0 : index
      %c0_11 = arith.constant 0 : index
      %12 = vector.load %arg6[%c0_10, %c0_11] : memref<16x256xf32, #tpu.memory_space<vmem>>, vector<16x256xf32>
      %c0_12 = arith.constant 0 : index
      %c0_13 = arith.constant 0 : index
      %13 = vector.load %arg4[%c0_12, %c0_13] : memref<1x256xf32, #tpu.memory_space<vmem>>, vector<1x256xf32>
      %14 = vector.broadcast %13 : vector<1x256xf32> to vector<16x256xf32>
      %15 = arith.addf %12, %14 : vector<16x256xf32>
      %16 = vector.extract_strided_slice %15 {offsets = [0, 0], sizes = [16, 128], strides = [1, 1]} : vector<16x256xf32> to vector<16x128xf32>
      %17 = vector.extract_strided_slice %15 {offsets = [0, 128], sizes = [16, 128], strides = [1, 1]} : vector<16x256xf32> to vector<16x128xf32>
      %cst_14 = arith.constant 0.000000e+00 : f32
      %18 = vector.broadcast %cst_14 : f32 to vector<16x128xf32>
      %19 = arith.subf %18, %17 : vector<16x128xf32>
      %20 = math.exp %19 : vector<16x128xf32>
      %cst_15 = arith.constant 1.000000e+00 : f32
      %21 = vector.broadcast %cst_15 : f32 to vector<16x128xf32>
      %22 = arith.addf %21, %20 : vector<16x128xf32>
      %23 = tpu.reciprocal %22 {approx = true} : vector<16x128xf32> -> vector<16x128xf32>
      %24 = arith.mulf %16, %23 : vector<16x128xf32>
      %c0_16 = arith.constant 0 : index
      %c0_17 = arith.constant 0 : index
      %25 = vector.load %arg5[%c0_16, %c0_17] : memref<16x128xf32, #tpu.memory_space<vmem>>, vector<16x128xf32>
      tpu.vector_store %arg5[%c0_16, %c0_17], %24 {strides = array<i32>} : memref<16x128xf32, #tpu.memory_space<vmem>>, vector<16x128xf32>,
    } else {
    }
    return
  }
  func.func @transform_0(%arg0: i32, %arg1: i32) -> (i32, i32) {
    %c0_i32 = arith.constant 0 : i32
    return %arg0, %arg1 : i32, i32
  }
  func.func @transform_1(%arg0: i32, %arg1: i32) -> (i32, i32) {
    %c0_i32 = arith.constant 0 : i32
    %c0_i32_0 = arith.constant 0 : i32
    return %c0_i32, %arg1 : i32, i32
  }
  func.func @transform_2(%arg0: i32, %arg1: i32) -> (i32, i32) {
    %c0_i32 = arith.constant 0 : i32
    %c0_i32_0 = arith.constant 0 : i32
    %c0_i32_1 = arith.constant 0 : i32
    return %c0_i32, %c0_i32_0 : i32, i32
  }
  func.func @transform_3(%arg0: i32, %arg1: i32) -> (i32, i32) {
    %c0_i32 = arith.constant 0 : i32
    %c0_i32_0 = arith.constant 0 : i32
    return %arg0, %c0_i32 : i32, i32
  }
}

</mosaic_0001>

<bundles_post_ra>
// kernel: fast_glu.1
= control target key start
LH: loop header
LB: loop body
LE: loop exit
PB: predicated region body
PF: predicated region fallthrough
CT: control target
= control target key end

     0   :  { %s320_s1 = inlined_call_operand.vmem [shape: f32[256,128], index: 1, kind: input, shape index: {}]   ;;  %s321_s0 = inlined_call_operand.vmem [shape: f32[16,128], index: 0, kind: input, shape index: {}]   ;;  %s322_s2 = inlined_call_operand.vmem [shape: f32[1,256], index: 2, kind: input, shape index: {}]   ;;  %s323_s3 = inlined_call_operand.vmem [shape: f32[16,128], index: 3, kind: output, shape index: {}]  }
   0x1   :  { %v59_v0 = vld [vmem:[%s320_s1 + $0xf8] sm:$0xff]  ;;  %v58_v2 = vld [vmem:[%s320_s1 + $0xf0] sm:$0xff]  ;;  %v57_v4 = vld [vmem:[%s320_s1 + $0xe8] sm:$0xff] }
   0x2   :  { %165 = vmatpush.xpose.msra.mxu3 %v59_v0  ;;  %83 = vmatpush.xpose.msra.mxu1 %v59_v0  ;;  %v43_v1 = vld [vmem:[%s320_s1 + $0x78] sm:$0xff]  ;;  %v42_v3 = vld [vmem:[%s320_s1 + $0x70] sm:$0xff]  ;;  %v41_v5 = vld [vmem:[%s320_s1 + $0x68] sm:$0xff] }
   0x3   :  { %149 = vmatpush.xpose.msra.mxu2 %v43_v1  ;;  %60 = vmatpush.xpose.msra.mxu0 %v43_v1  ;;  %v56_v6 = vld [vmem:[%s320_s1 + $0xe0] sm:$0xff]  ;;  %v55_v8 = vld [vmem:[%s320_s1 + $0xd8] sm:$0xff]  ;;  %v54_v10 = vld [vmem:[%s320_s1 + $0xd0] sm:$0xff] }
   0x4   :  { %v40_v7 = vld [vmem:[%s320_s1 + $0x60] sm:$0xff]  ;;  %v39_v9 = vld [vmem:[%s320_s1 + $0x58] sm:$0xff]  ;;  %v38_v11 = vld [vmem:[%s320_s1 + $0x50] sm:$0xff] }
   0x5   :  { %v53_v12 = vld [vmem:[%s320_s1 + $0xc8] sm:$0xff]  ;;  %v52_v14 = vld [vmem:[%s320_s1 + $0xc0] sm:$0xff]  ;;  %v51_v16 = vld [vmem:[%s320_s1 + $0xb8] sm:$0xff] }
   0x6   :  { %166 = vmatpush.xpose.msra.mxu3 %v58_v2  ;;  %84 = vmatpush.xpose.msra.mxu1 %v58_v2  ;;  %v37_v13 = vld [vmem:[%s320_s1 + $0x48] sm:$0xff]  ;;  %v36_v15 = vld [vmem:[%s320_s1 + $0x40] sm:$0xff]  ;;  %v35_v17 = vld [vmem:[%s320_s1 + $0x38] sm:$0xff] }
   0x7   :  { %150 = vmatpush.xpose.msra.mxu2 %v42_v3  ;;  %61 = vmatpush.xpose.msra.mxu0 %v42_v3  ;;  %v50_v18 = vld [vmem:[%s320_s1 + $0xb0] sm:$0xff]  ;;  %v49_v20 = vld [vmem:[%s320_s1 + $0xa8] sm:$0xff]  ;;  %v48_v22 = vld [vmem:[%s320_s1 + $0xa0] sm:$0xff] }
   0x8   :  { %v34_v19 = vld [vmem:[%s320_s1 + $0x30] sm:$0xff]  ;;  %v33_v21 = vld [vmem:[%s320_s1 + $0x28] sm:$0xff]  ;;  %v32_v23 = vld [vmem:[%s320_s1 + $0x20] sm:$0xff] }
   0x9   :  { %v47_v24 = vld [vmem:[%s320_s1 + $0x98] sm:$0xff]  ;;  %v46_v26 = vld [vmem:[%s320_s1 + $0x90] sm:$0xff]  ;;  %v45_v28 = vld [vmem:[%s320_s1 + $0x88] sm:$0xff] }
   0xa   :  { %167 = vmatpush.xpose.msra.mxu3 %v57_v4  ;;  %85 = vmatpush.xpose.msra.mxu1 %v57_v4  ;;  %v31_v25 = vld [vmem:[%s320_s1 + $0x18] sm:$0xff]  ;;  %v30_v27 = vld [vmem:[%s320_s1 + $0x10] sm:$0xff]  ;;  %v29_v29 = vld [vmem:[%s320_s1 + $0x8] sm:$0xff] }
   0xb   :  { %151 = vmatpush.xpose.msra.mxu2 %v41_v5  ;;  %62 = vmatpush.xpose.msra.mxu0 %v41_v5  ;;  %v44_v30 = vld [vmem:[%s320_s1 + $0x80] sm:$0xff]  ;;  %v27_v32 = vld [vmem:[%s321_s0 + $0x8] sm:$0xff] }
   0xc   :  { %v28_v31 = vld [vmem:[%s320_s1] sm:$0xff] }
   0xd   :  { %v26_v33 = vld [vmem:[%s321_s0] sm:$0xff] }
   0xe   :  { %168 = vmatpush.xpose.msra.mxu3 %v56_v6  ;;  %86 = vmatpush.xpose.msra.mxu1 %v56_v6  ;;  %v121_v34 = vld [vmem:[%s322_s2] sm:$0x3] }
   0xf   :  { %152 = vmatpush.xpose.msra.mxu2 %v40_v7  ;;  %63 = vmatpush.xpose.msra.mxu0 %v40_v7  ;;  %v124_v35 = vperm.slane %v121_v34, 1  ;;  %v123_v46 = vperm.slane %v121_v34, 0 }
  0x12   :  { %169 = vmatpush.xpose.msra.mxu3 %v55_v8  ;;  %87 = vmatpush.xpose.msra.mxu1 %v55_v8 }
  0x13   :  { %153 = vmatpush.xpose.msra.mxu2 %v39_v9  ;;  %64 = vmatpush.xpose.msra.mxu0 %v39_v9 }
  0x16   :  { %170 = vmatpush.xpose.msra.mxu3 %v54_v10  ;;  %88 = vmatpush.xpose.msra.mxu1 %v54_v10 }
  0x17   :  { %154 = vmatpush.xpose.msra.mxu2 %v38_v11  ;;  %65 = vmatpush.xpose.msra.mxu0 %v38_v11 }
  0x1a   :  { %171 = vmatpush.xpose.msra.mxu3 %v53_v12  ;;  %89 = vmatpush.xpose.msra.mxu1 %v53_v12 }
  0x1b   :  { %155 = vmatpush.xpose.msra.mxu2 %v37_v13  ;;  %66 = vmatpush.xpose.msra.mxu0 %v37_v13 }
  0x1e   :  { %172 = vmatpush.xpose.msra.mxu3 %v52_v14  ;;  %90 = vmatpush.xpose.msra.mxu1 %v52_v14 }
  0x1f   :  { %156 = vmatpush.xpose.msra.mxu2 %v36_v15  ;;  %67 = vmatpush.xpose.msra.mxu0 %v36_v15 }
  0x22   :  { %173 = vmatpush.xpose.msra.mxu3 %v51_v16  ;;  %91 = vmatpush.xpose.msra.mxu1 %v51_v16 }
  0x23   :  { %157 = vmatpush.xpose.msra.mxu2 %v35_v17  ;;  %68 = vmatpush.xpose.msra.mxu0 %v35_v17 }
  0x26   :  { %174 = vmatpush.xpose.msra.mxu3 %v50_v18  ;;  %92 = vmatpush.xpose.msra.mxu1 %v50_v18 }
  0x27   :  { %158 = vmatpush.xpose.msra.mxu2 %v34_v19  ;;  %69 = vmatpush.xpose.msra.mxu0 %v34_v19 }
  0x2a   :  { %175 = vmatpush.xpose.msra.mxu3 %v49_v20  ;;  %93 = vmatpush.xpose.msra.mxu1 %v49_v20 }
  0x2b   :  { %159 = vmatpush.xpose.msra.mxu2 %v33_v21  ;;  %70 = vmatpush.xpose.msra.mxu0 %v33_v21 }
  0x2e   :  { %176 = vmatpush.xpose.msra.mxu3 %v48_v22  ;;  %94 = vmatpush.xpose.msra.mxu1 %v48_v22 }
  0x2f   :  { %160 = vmatpush.xpose.msra.mxu2 %v32_v23  ;;  %71 = vmatpush.xpose.msra.mxu0 %v32_v23 }
  0x32   :  { %177 = vmatpush.xpose.msra.mxu3 %v47_v24  ;;  %95 = vmatpush.xpose.msra.mxu1 %v47_v24 }
  0x33   :  { %161 = vmatpush.xpose.msra.mxu2 %v31_v25  ;;  %72 = vmatpush.xpose.msra.mxu0 %v31_v25 }
  0x36   :  { %178 = vmatpush.xpose.msra.mxu3 %v46_v26  ;;  %96 = vmatpush.xpose.msra.mxu1 %v46_v26 }
  0x37   :  { %162 = vmatpush.xpose.msra.mxu2 %v30_v27  ;;  %73 = vmatpush.xpose.msra.mxu0 %v30_v27 }
  0x3a   :  { %179 = vmatpush.xpose.msra.mxu3 %v45_v28  ;;  %97 = vmatpush.xpose.msra.mxu1 %v45_v28 }
  0x3b   :  { %163 = vmatpush.xpose.msra.mxu2 %v29_v29  ;;  %74 = vmatpush.xpose.msra.mxu0 %v29_v29 }
  0x3e   :  { %180 = vmatpush.xpose.msra.mxu3 %v44_v30  ;;  %98 = vmatpush.xpose.msra.mxu1 %v44_v30 }
  0x3f   :  { %164 = vmatpush.xpose.msra.mxu2 %v28_v31  ;;  %75 = vmatpush.xpose.msra.mxu0 %v28_v31 }
  0x41   :  { %102 = vmatmul.f32.vlgmr.msra.gmra.mxu3 %v27_v32  ;;  %99 = vmatmul.f32.vlgmr.msra.gmra.mxu1 %v26_v33 }
  0x42   :  { %79 = vmatmul.f32.vlgmr.msra.gmra.mxu2 %v27_v32  ;;  %76 = vmatmul.f32.vlgmr.msra.gmra.mxu0 %v26_v33 }
  0xbe   :  { %v100_v36 = vpop.f32.mrf.mxu1 }
  0xbf   :  { %v128_v37 = vadd.f32 %v124_v35, %v100_v36  ;;  %v77_v47 = vpop.f32.mrf.mxu0 }
  0xc0   :  { %v127_v49 = vadd.f32 %v123_v46, %v77_v47 }
  0xc1   :  { %v131_v38 = vsub.f32 0.0, %v128_v37 }
  0xc3   :  { %v133_v39 = vmul.f32 1.442695, %v131_v38 }
  0xc4   :  { %v103_v40 = vpop.f32.mrf.mxu3 }
  0xc5   :  { %181 = vpow2.f32 %v133_v39  ;;  %v130_v41 = vadd.f32 %v124_v35, %v103_v40  ;;  %v80_v52 = vpop.f32.mrf.mxu2 }
  0xc6   :  { %v129_v54 = vadd.f32 %v123_v46, %v80_v52 }
  0xc7   :  { %v132_v42 = vsub.f32 0.0, %v130_v41 }
  0xc9   :  { %v135_v43 = vmul.f32 1.442695, %v132_v42 }
  0xcb   :  { %v182_v44 = vpop.eup %181  ;;  %183 = vpow2.f32 %v135_v43 }
  0xcc   :  { %v137_v45 = vadd.f32 1.0, %v182_v44 }
  0xce   :  { %185 = vrcp.f32 %v137_v45 }
  0xd1   :  { %v184_v48 = vpop.eup %183 }
  0xd2   :  { %v138_v50 = vadd.f32 1.0, %v184_v48 }
  0xd4   :  { %v186_v51 = vpop.eup %185  ;;  %187 = vrcp.f32 %v138_v50 }
  0xd5   :  { %v141_v53 = vmul.f32 %v186_v51, %v127_v49 }
  0xd7   :  { %143 = vst [vmem:[%s323_s3] sm:$0xff] %v141_v53 }
  0xda   :  { %v188_v55 = vpop.eup %187 }
  0xdb   :  { %v142_v56 = vmul.f32 %v188_v55, %v129_v54 }
  0xdd   :  { %144 = vst [vmem:[%s323_s3 + $0x8] sm:$0xff] %v142_v56 }

</bundles_post_ra>
